<compile_context>
chip_gen: v7x
topology: tpu7x:2x2x1
jax: 0.10.0
libtpu: 0.0.40
codegen_flags: <defaults>
</compile_context>

<pallas_src>
import functools
import math

import jax
import jax.numpy as jnp
from jax.experimental import pallas as pl
from jax.experimental.pallas import tpu as pltpu


def mha_kernel(x_ref, wq_ref, wk_ref, wv_ref, wo_ref, bo_ref, o_ref,
               k_scr, v_scr, attn_scr, *, d_k, num_heads, q_tile):
    # x_ref:    (1, S, D)  bf16, full sequence of this batch element (queries + K/V source)
    # wq_ref:   (D, D)     bf16, W_q^T with 1/sqrt(d_k) pre-folded
    # wk_ref:   (D, D)     bf16, W_k^T
    # wv_ref:   (D, D)     bf16, W_v^T
    # wo_ref:   (D, D)     bf16, W_o^T
    # bo_ref:   (1, D)     f32,  output-projection bias
    # o_ref:    (1, TQ, D) output tile (lane-dense full-D width)
    # k_scr/v_scr: (S, D)  bf16 VMEM — K/V cache for this batch element (all heads)
    # attn_scr: (TQ, D)    bf16 VMEM — head-concat staging before the W_o matmul
    qi = pl.program_id(1)

    # K/V projection depends only on the batch element -> compute once per grid row
    # (q axis is "arbitrary", so the scratch legally carries across query tiles).
    @pl.when(qi == 0)
    def _project_kv():
        x_full = x_ref[0]                                                 # (S, D) bf16
        k_scr[...] = jnp.dot(x_full, wk_ref[...],
                             preferred_element_type=jnp.float32).astype(k_scr.dtype)
        v_scr[...] = jnp.dot(x_full, wv_ref[...],
                             preferred_element_type=jnp.float32).astype(v_scr.dtype)

    # Query rows come straight out of the resident full-sequence block (no duplicate input).
    row0 = pl.multiple_of(qi * q_tile, q_tile)
    x_q = x_ref[0, pl.ds(row0, q_tile), :]                                # (TQ, D) bf16

    # Full-width (D -> D) query projection; 1/sqrt(d_k) already folded into wq (in f32).
    q_all = jnp.dot(x_q, wq_ref[...],
                    preferred_element_type=jnp.float32).astype(jnp.bfloat16)  # (TQ, D)

    # Per-head attention. Static unroll (num_heads is a small compile-time constant) keeps
    # all head slices at static lane offsets (no dynamic-lane relayouts). Scores / softmax
    # stay f32 (v5e has no bf16 VPU/EUP); the softmax divide uses the EUP approx reciprocal.
    for h in range(num_heads):
        lo = h * d_k
        qh = q_all[:, lo:lo + d_k]                                        # (TQ, d_k) bf16
        kh = k_scr[:, lo:lo + d_k]                                        # (S,  d_k) bf16
        vh = v_scr[:, lo:lo + d_k]                                        # (S,  d_k) bf16
        # scores = q @ k^T expressed as a contraction over the last dims (no transpose op).
        s = jax.lax.dot_general(qh, kh, (((1,), (1,)), ((), ())),
                                preferred_element_type=jnp.float32)       # (TQ, S)
        s = s - jnp.max(s, axis=-1, keepdims=True)
        p = jnp.exp(s)
        p = p * pl.reciprocal(jnp.sum(p, axis=-1, keepdims=True), approx=True)
        attn_scr[:, lo:lo + d_k] = jnp.dot(
            p.astype(jnp.bfloat16), vh,
            preferred_element_type=jnp.float32).astype(attn_scr.dtype)    # (TQ, d_k)

    # Head-concat lives in attn_scr -> output projection is one dense K=D matmul.
    out = jnp.dot(attn_scr[...], wo_ref[...], preferred_element_type=jnp.float32)  # (TQ, D)
    o_ref[0] = (out + bo_ref[...]).astype(o_ref.dtype)


def _choose_q_tile(seq_len):
    for cand in (512, 256, 128):
        if seq_len % cand == 0:
            return cand
    return seq_len


def _pad_tile_bytes(rows, cols, itemsize):
    # Conservative (8, 128) sublane/lane padding estimate.
    return (-(-rows // 8) * 8) * (-(-cols // 128) * 128) * itemsize


def multi_head_attention(x, wq, wk, wv, wo, bo, *, num_heads):
    B, S, D = x.shape
    assert D % num_heads == 0
    d_k = D // num_heads
    TQ = _choose_q_tile(S)
    num_q = S // TQ

    scale = 1.0 / math.sqrt(d_k)
    # Pre-transpose (PyTorch Linear weights are (out, in)) and pre-cast to bf16 in the
    # wrapper; fold the 1/sqrt(d_k) scale into W_q in f32 BEFORE the cast.
    wq_t = (wq.T * scale).astype(jnp.bfloat16)     # (D, D)
    wk_t = wk.T.astype(jnp.bfloat16)               # (D, D)
    wv_t = wv.T.astype(jnp.bfloat16)               # (D, D)
    wo_t = wo.T.astype(jnp.bfloat16)               # (D, D)
    x_bf = x.astype(jnp.bfloat16)
    bo2 = bo.reshape(1, D).astype(jnp.float32)

    kernel = functools.partial(mha_kernel, d_k=d_k, num_heads=num_heads, q_tile=TQ)

    # VMEM budget sized from the actual (double-buffered) blocks, scratch and intermediates.
    est = (2 * _pad_tile_bytes(S, D, 2)            # x block (bf16, 2 buffers)
           + 2 * 4 * _pad_tile_bytes(D, D, 2)      # 4 weight blocks (bf16, 2 buffers)
           + 2 * _pad_tile_bytes(1, D, 4)          # bias
           + 2 * _pad_tile_bytes(TQ, D, 4)         # output block (2 buffers)
           + 2 * _pad_tile_bytes(S, D, 2)          # K / V scratch
           + _pad_tile_bytes(TQ, D, 2)             # attn-concat scratch
           + 2 * _pad_tile_bytes(TQ, S, 4)         # score / prob tiles
           + 4 * _pad_tile_bytes(TQ, D, 4))        # projections / headroom
    vmem_limit = min(max(int(est * 1.5) + (8 << 20), 32 << 20), 64 << 20)

    cost = pl.CostEstimate(
        flops=int(B * (8 * S * D * D + 4 * S * S * D)),
        transcendentals=int(B * num_heads * S * S),
        bytes_accessed=int(B * S * D * 2 + 4 * D * D * 2 + D * 4
                           + B * S * D * x.dtype.itemsize))

    return pl.pallas_call(
        kernel,
        out_shape=jax.ShapeDtypeStruct((B, S, D), x.dtype),
        grid_spec=pltpu.PrefetchScalarGridSpec(
            num_scalar_prefetch=0,
            grid=(B, num_q),
            in_specs=[
                pl.BlockSpec((1, S, D), lambda b, q: (b, 0, 0)),   # x (bf16), full sequence
                pl.BlockSpec((D, D), lambda b, q: (0, 0)),         # W_q^T * 1/sqrt(d_k)
                pl.BlockSpec((D, D), lambda b, q: (0, 0)),         # W_k^T
                pl.BlockSpec((D, D), lambda b, q: (0, 0)),         # W_v^T
                pl.BlockSpec((D, D), lambda b, q: (0, 0)),         # W_o^T
                pl.BlockSpec((1, D), lambda b, q: (0, 0)),         # b_o
            ],
            out_specs=pl.BlockSpec((1, TQ, D), lambda b, q: (b, q, 0)),
            scratch_shapes=[
                pltpu.VMEM((S, D), jnp.bfloat16),    # K cache (all heads, lane-dense)
                pltpu.VMEM((S, D), jnp.bfloat16),    # V cache
                pltpu.VMEM((TQ, D), jnp.bfloat16),   # head-concat staging
            ],
        ),
        compiler_params=pltpu.CompilerParams(
            dimension_semantics=("parallel", "arbitrary"),
            vmem_limit_bytes=vmem_limit),
        cost_estimate=cost,
    )(x_bf, wq_t, wk_t, wv_t, wo_t, bo2)


def mha_reference(x, wq, wk, wv, wo, bo, *, num_heads):
    B, S, D = x.shape
    d_k = D // num_heads
    q = (x @ wq.T).reshape(B, S, num_heads, d_k).transpose(0, 2, 1, 3)
    k = (x @ wk.T).reshape(B, S, num_heads, d_k).transpose(0, 2, 1, 3)
    v = (x @ wv.T).reshape(B, S, num_heads, d_k).transpose(0, 2, 1, 3)
    scores = jnp.einsum("bhqd,bhkd->bhqk", q, k) / math.sqrt(d_k)
    p = jax.nn.softmax(scores, axis=-1)
    o = jnp.einsum("bhqk,bhkd->bhqd", p, v)
    o = o.transpose(0, 2, 1, 3).reshape(B, S, D)
    return o @ wo.T + bo


if __name__ == "__main__":
    B, S, D, H = 2, 8, 32, 4

    key = jax.random.PRNGKey(0)
    kx, kq, kk, kv, ko, kb = jax.random.split(key, 6)

    x = jax.random.normal(kx, (B, S, D), dtype=jnp.float32)
    wq = jax.random.normal(kq, (D, D), dtype=jnp.float32) * 0.02
    wk = jax.random.normal(kk, (D, D), dtype=jnp.float32) * 0.02
    wv = jax.random.normal(kv, (D, D), dtype=jnp.float32) * 0.02
    wo = jax.random.normal(ko, (D, D), dtype=jnp.float32) * 0.02
    bo = jax.random.normal(kb, (D,), dtype=jnp.float32) * 0.02

    out = multi_head_attention(x, wq, wk, wv, wo, bo, num_heads=H)
    out = jax.block_until_ready(out)

    ref = mha_reference(x, wq, wk, wv, wo, bo, num_heads=H)
    # bf16 MXU operands + approximate reciprocal => loosened tolerance vs the f32 reference.
    assert jnp.allclose(out, ref, atol=1e-2, rtol=1e-2), (
        f"mismatch vs JAX reference, max |diff| = {jnp.max(jnp.abs(out - ref))}")

    print("KERNEL_OK")
</pallas_src>

<mosaic_0001>
module attributes {stable_mosaic.version = 11 : i64} {
  func.func @mha_kernel(%arg0: i32, %arg1: i32, %arg2: memref<1x8x32xbf16, #tpu.memory_space<vmem>>, %arg3: memref<32x32xbf16, #tpu.memory_space<vmem>>, %arg4: memref<32x32xbf16, #tpu.memory_space<vmem>>, %arg5: memref<32x32xbf16, #tpu.memory_space<vmem>>, %arg6: memref<32x32xbf16, #tpu.memory_space<vmem>>, %arg7: memref<1x32xf32, #tpu.memory_space<vmem>>, %arg8: memref<1x8x32xf32, #tpu.memory_space<vmem>>, %arg9: memref<8x32xbf16, #tpu.memory_space<vmem>>, %arg10: memref<8x32xbf16, #tpu.memory_space<vmem>>, %arg11: memref<8x32xbf16, #tpu.memory_space<vmem>>) attributes {dimension_semantics = [#tpu.dimension_semantics<parallel>, #tpu.dimension_semantics<arbitrary>], iteration_bounds = array<i64: 2, 1>, scalar_prefetch = 0 : i64, scratch_operands = 3 : i64, tpu.core_type = #tpu.core_type<tc>, window_params = [{transform_indices = @transform_0, window_bounds = array<i64: 1, 8, 32>}, {pipeline_mode = #tpu.pipeline_mode<synchronous>, transform_indices = @transform_1, window_bounds = array<i64: 32, 32>}, {pipeline_mode = #tpu.pipeline_mode<synchronous>, transform_indices = @transform_2, window_bounds = array<i64: 32, 32>}, {pipeline_mode = #tpu.pipeline_mode<synchronous>, transform_indices = @transform_3, window_bounds = array<i64: 32, 32>}, {pipeline_mode = #tpu.pipeline_mode<synchronous>, transform_indices = @transform_4, window_bounds = array<i64: 32, 32>}, {pipeline_mode = #tpu.pipeline_mode<synchronous>, transform_indices = @transform_5, window_bounds = array<i64: 1, 32>}, {transform_indices = @transform_6, window_bounds = array<i64: 1, 8, 32>}]} {
    %c0_i32 = arith.constant 0 : i32
    %0 = arith.cmpi eq, %arg1, %c0_i32 : i32
    %1 = arith.extui %0 : i1 to i32
    %c0_i32_0 = arith.constant 0 : i32
    %2 = arith.cmpi ne, %1, %c0_i32_0 : i32
    scf.if %2 {
      %c0_51 = arith.constant 0 : index
      %c0_52 = arith.constant 0 : index
      %c0_53 = arith.constant 0 : index
      %92 = vector.load %arg2[%c0_51, %c0_52, %c0_53] : memref<1x8x32xbf16, #tpu.memory_space<vmem>>, vector<1x8x32xbf16>
      %93 = vector.shape_cast %92 : vector<1x8x32xbf16> to vector<8x32xbf16>
      %c0_54 = arith.constant 0 : index
      %c0_55 = arith.constant 0 : index
      %94 = vector.load %arg4[%c0_54, %c0_55] : memref<32x32xbf16, #tpu.memory_space<vmem>>, vector<32x32xbf16>
      %cst_56 = arith.constant dense<0.000000e+00> : vector<8x32xf32>
      %95 = tpu.matmul %93, %94, %cst_56 {dimension_numbers = #tpu.dot_dimension_numbers<[1], [0], [0], [1], [0, 0, 1, 1], [], []>} : vector<8x32xbf16>, vector<32x32xbf16>, vector<8x32xf32> -> vector<8x32xf32>
      %96 = arith.truncf %95 : vector<8x32xf32> to vector<8x32xbf16>
      %c0_57 = arith.constant 0 : index
      %c0_58 = arith.constant 0 : index
      %97 = vector.load %arg9[%c0_57, %c0_58] : memref<8x32xbf16, #tpu.memory_space<vmem>>, vector<8x32xbf16>
      tpu.vector_store %arg9[%c0_57, %c0_58], %96 {strides = array<i32>} : memref<8x32xbf16, #tpu.memory_space<vmem>>, vector<8x32xbf16>,
      %c0_59 = arith.constant 0 : index
      %c0_60 = arith.constant 0 : index
      %98 = vector.load %arg5[%c0_59, %c0_60] : memref<32x32xbf16, #tpu.memory_space<vmem>>, vector<32x32xbf16>
      %cst_61 = arith.constant dense<0.000000e+00> : vector<8x32xf32>
      %99 = tpu.matmul %93, %98, %cst_61 {dimension_numbers = #tpu.dot_dimension_numbers<[1], [0], [0], [1], [0, 0, 1, 1], [], []>} : vector<8x32xbf16>, vector<32x32xbf16>, vector<8x32xf32> -> vector<8x32xf32>
      %100 = arith.truncf %99 : vector<8x32xf32> to vector<8x32xbf16>
      %c0_62 = arith.constant 0 : index
      %c0_63 = arith.constant 0 : index
      %101 = vector.load %arg10[%c0_62, %c0_63] : memref<8x32xbf16, #tpu.memory_space<vmem>>, vector<8x32xbf16>
      tpu.vector_store %arg10[%c0_62, %c0_63], %100 {strides = array<i32>} : memref<8x32xbf16, #tpu.memory_space<vmem>>, vector<8x32xbf16>,
    } else {
    }
    %c8_i32 = arith.constant 8 : i32
    %3 = arith.muli %arg1, %c8_i32 : i32
    %4 = tpu.assume_multiple %3, 8 : i32
    %c0 = arith.constant 0 : index
    %5 = arith.index_cast %4 : i32 to index
    %c0_1 = arith.constant 0 : index
    %6 = vector.load %arg2[%c0, %5, %c0_1] : memref<1x8x32xbf16, #tpu.memory_space<vmem>>, vector<1x8x32xbf16>
    %7 = vector.shape_cast %6 : vector<1x8x32xbf16> to vector<8x32xbf16>
    %c0_2 = arith.constant 0 : index
    %c0_3 = arith.constant 0 : index
    %8 = vector.load %arg3[%c0_2, %c0_3] : memref<32x32xbf16, #tpu.memory_space<vmem>>, vector<32x32xbf16>
    %cst = arith.constant dense<0.000000e+00> : vector<8x32xf32>
    %9 = tpu.matmul %7, %8, %cst {dimension_numbers = #tpu.dot_dimension_numbers<[1], [0], [0], [1], [0, 0, 1, 1], [], []>} : vector<8x32xbf16>, vector<32x32xbf16>, vector<8x32xf32> -> vector<8x32xf32>
    %10 = arith.truncf %9 : vector<8x32xf32> to vector<8x32xbf16>
    %11 = vector.extract_strided_slice %10 {offsets = [0, 0], sizes = [8, 8], strides = [1, 1]} : vector<8x32xbf16> to vector<8x8xbf16>
    %c0_4 = arith.constant 0 : index
    %c0_5 = arith.constant 0 : index
    %12 = vector.load %arg9[%c0_4, %c0_5] : memref<8x32xbf16, #tpu.memory_space<vmem>>, vector<8x8xbf16>
    %c0_6 = arith.constant 0 : index
    %c0_7 = arith.constant 0 : index
    %13 = vector.load %arg10[%c0_6, %c0_7] : memref<8x32xbf16, #tpu.memory_space<vmem>>, vector<8x8xbf16>
    %cst_8 = arith.constant dense<0.000000e+00> : vector<8x8xf32>
    %14 = tpu.matmul %11, %12, %cst_8 {dimension_numbers = #tpu.dot_dimension_numbers<[1], [1], [0], [0], [0, 0, 1, 0], [], []>} : vector<8x8xbf16>, vector<8x8xbf16>, vector<8x8xf32> -> vector<8x8xf32>
    %cst_9 = arith.constant dense<0xFF800000> : vector<8xf32>
    %15 = vector.multi_reduction <maximumf>, %14, %cst_9 [1] : vector<8x8xf32> to vector<8xf32>
    %16 = vector.shape_cast %15 : vector<8xf32> to vector<8x1xf32>
    %17 = vector.broadcast %16 : vector<8x1xf32> to vector<8x8xf32>
    %18 = arith.subf %14, %17 : vector<8x8xf32>
    %19 = math.exp %18 : vector<8x8xf32>
    %cst_10 = arith.constant dense<0.000000e+00> : vector<8xf32>
    %20 = vector.multi_reduction <add>, %19, %cst_10 [1] : vector<8x8xf32> to vector<8xf32>
    %21 = vector.shape_cast %20 : vector<8xf32> to vector<8x1xf32>
    %22 = tpu.reciprocal %21 {approx = true} : vector<8x1xf32> -> vector<8x1xf32>
    %23 = vector.broadcast %22 : vector<8x1xf32> to vector<8x8xf32>
    %24 = arith.mulf %19, %23 : vector<8x8xf32>
    %25 = arith.truncf %24 : vector<8x8xf32> to vector<8x8xbf16>
    %cst_11 = arith.constant dense<0.000000e+00> : vector<8x8xf32>
    %26 = tpu.matmul %25, %13, %cst_11 {dimension_numbers = #tpu.dot_dimension_numbers<[1], [0], [0], [1], [0, 0, 1, 1], [], []>} : vector<8x8xbf16>, vector<8x8xbf16>, vector<8x8xf32> -> vector<8x8xf32>
    %27 = arith.truncf %26 : vector<8x8xf32> to vector<8x8xbf16>
    %c0_12 = arith.constant 0 : index
    %c0_13 = arith.constant 0 : index
    %28 = vector.load %arg11[%c0_12, %c0_13] : memref<8x32xbf16, #tpu.memory_space<vmem>>, vector<8x8xbf16>
    tpu.vector_store %arg11[%c0_12, %c0_13], %27 {strides = array<i32>} : memref<8x32xbf16, #tpu.memory_space<vmem>>, vector<8x8xbf16>,
    %29 = vector.extract_strided_slice %10 {offsets = [0, 8], sizes = [8, 8], strides = [1, 1]} : vector<8x32xbf16> to vector<8x8xbf16>
    %c0_14 = arith.constant 0 : index
    %c8 = arith.constant 8 : index
    %30 = vector.load %arg9[%c0_14, %c8] : memref<8x32xbf16, #tpu.memory_space<vmem>>, vector<8x8xbf16>
    %c0_15 = arith.constant 0 : index
    %c8_16 = arith.constant 8 : index
    %31 = vector.load %arg10[%c0_15, %c8_16] : memref<8x32xbf16, #tpu.memory_space<vmem>>, vector<8x8xbf16>
    %cst_17 = arith.constant dense<0.000000e+00> : vector<8x8xf32>
    %32 = tpu.matmul %29, %30, %cst_17 {dimension_numbers = #tpu.dot_dimension_numbers<[1], [1], [0], [0], [0, 0, 1, 0], [], []>} : vector<8x8xbf16>, vector<8x8xbf16>, vector<8x8xf32> -> vector<8x8xf32>
    %cst_18 = arith.constant dense<0xFF800000> : vector<8xf32>
    %33 = vector.multi_reduction <maximumf>, %32, %cst_18 [1] : vector<8x8xf32> to vector<8xf32>
    %34 = vector.shape_cast %33 : vector<8xf32> to vector<8x1xf32>
    %35 = vector.broadcast %34 : vector<8x1xf32> to vector<8x8xf32>
    %36 = arith.subf %32, %35 : vector<8x8xf32>
    %37 = math.exp %36 : vector<8x8xf32>
    %cst_19 = arith.constant dense<0.000000e+00> : vector<8xf32>
    %38 = vector.multi_reduction <add>, %37, %cst_19 [1] : vector<8x8xf32> to vector<8xf32>
    %39 = vector.shape_cast %38 : vector<8xf32> to vector<8x1xf32>
    %40 = tpu.reciprocal %39 {approx = true} : vector<8x1xf32> -> vector<8x1xf32>
    %41 = vector.broadcast %40 : vector<8x1xf32> to vector<8x8xf32>
    %42 = arith.mulf %37, %41 : vector<8x8xf32>
    %43 = arith.truncf %42 : vector<8x8xf32> to vector<8x8xbf16>
    %cst_20 = arith.constant dense<0.000000e+00> : vector<8x8xf32>
    %44 = tpu.matmul %43, %31, %cst_20 {dimension_numbers = #tpu.dot_dimension_numbers<[1], [0], [0], [1], [0, 0, 1, 1], [], []>} : vector<8x8xbf16>, vector<8x8xbf16>, vector<8x8xf32> -> vector<8x8xf32>
    %45 = arith.truncf %44 : vector<8x8xf32> to vector<8x8xbf16>
    %c0_21 = arith.constant 0 : index
    %c8_22 = arith.constant 8 : index
    %46 = vector.load %arg11[%c0_21, %c8_22] : memref<8x32xbf16, #tpu.memory_space<vmem>>, vector<8x8xbf16>
    tpu.vector_store %arg11[%c0_21, %c8_22], %45 {strides = array<i32>} : memref<8x32xbf16, #tpu.memory_space<vmem>>, vector<8x8xbf16>,
    %47 = vector.extract_strided_slice %10 {offsets = [0, 16], sizes = [8, 8], strides = [1, 1]} : vector<8x32xbf16> to vector<8x8xbf16>
    %c0_23 = arith.constant 0 : index
    %c16 = arith.constant 16 : index
    %48 = vector.load %arg9[%c0_23, %c16] : memref<8x32xbf16, #tpu.memory_space<vmem>>, vector<8x8xbf16>
    %c0_24 = arith.constant 0 : index
    %c16_25 = arith.constant 16 : index
    %49 = vector.load %arg10[%c0_24, %c16_25] : memref<8x32xbf16, #tpu.memory_space<vmem>>, vector<8x8xbf16>
    %cst_26 = arith.constant dense<0.000000e+00> : vector<8x8xf32>
    %50 = tpu.matmul %47, %48, %cst_26 {dimension_numbers = #tpu.dot_dimension_numbers<[1], [1], [0], [0], [0, 0, 1, 0], [], []>} : vector<8x8xbf16>, vector<8x8xbf16>, vector<8x8xf32> -> vector<8x8xf32>
    %cst_27 = arith.constant dense<0xFF800000> : vector<8xf32>
    %51 = vector.multi_reduction <maximumf>, %50, %cst_27 [1] : vector<8x8xf32> to vector<8xf32>
    %52 = vector.shape_cast %51 : vector<8xf32> to vector<8x1xf32>
    %53 = vector.broadcast %52 : vector<8x1xf32> to vector<8x8xf32>
    %54 = arith.subf %50, %53 : vector<8x8xf32>
    %55 = math.exp %54 : vector<8x8xf32>
    %cst_28 = arith.constant dense<0.000000e+00> : vector<8xf32>
    %56 = vector.multi_reduction <add>, %55, %cst_28 [1] : vector<8x8xf32> to vector<8xf32>
    %57 = vector.shape_cast %56 : vector<8xf32> to vector<8x1xf32>
    %58 = tpu.reciprocal %57 {approx = true} : vector<8x1xf32> -> vector<8x1xf32>
    %59 = vector.broadcast %58 : vector<8x1xf32> to vector<8x8xf32>
    %60 = arith.mulf %55, %59 : vector<8x8xf32>
    %61 = arith.truncf %60 : vector<8x8xf32> to vector<8x8xbf16>
    %cst_29 = arith.constant dense<0.000000e+00> : vector<8x8xf32>
    %62 = tpu.matmul %61, %49, %cst_29 {dimension_numbers = #tpu.dot_dimension_numbers<[1], [0], [0], [1], [0, 0, 1, 1], [], []>} : vector<8x8xbf16>, vector<8x8xbf16>, vector<8x8xf32> -> vector<8x8xf32>
    %63 = arith.truncf %62 : vector<8x8xf32> to vector<8x8xbf16>
    %c0_30 = arith.constant 0 : index
    %c16_31 = arith.constant 16 : index
    %64 = vector.load %arg11[%c0_30, %c16_31] : memref<8x32xbf16, #tpu.memory_space<vmem>>, vector<8x8xbf16>
    tpu.vector_store %arg11[%c0_30, %c16_31], %63 {strides = array<i32>} : memref<8x32xbf16, #tpu.memory_space<vmem>>, vector<8x8xbf16>,
    %65 = vector.extract_strided_slice %10 {offsets = [0, 24], sizes = [8, 8], strides = [1, 1]} : vector<8x32xbf16> to vector<8x8xbf16>
    %c0_32 = arith.constant 0 : index
    %c24 = arith.constant 24 : index
    %66 = vector.load %arg9[%c0_32, %c24] : memref<8x32xbf16, #tpu.memory_space<vmem>>, vector<8x8xbf16>
    %c0_33 = arith.constant 0 : index
    %c24_34 = arith.constant 24 : index
    %67 = vector.load %arg10[%c0_33, %c24_34] : memref<8x32xbf16, #tpu.memory_space<vmem>>, vector<8x8xbf16>
    %cst_35 = arith.constant dense<0.000000e+00> : vector<8x8xf32>
    %68 = tpu.matmul %65, %66, %cst_35 {dimension_numbers = #tpu.dot_dimension_numbers<[1], [1], [0], [0], [0, 0, 1, 0], [], []>} : vector<8x8xbf16>, vector<8x8xbf16>, vector<8x8xf32> -> vector<8x8xf32>
    %cst_36 = arith.constant dense<0xFF800000> : vector<8xf32>
    %69 = vector.multi_reduction <maximumf>, %68, %cst_36 [1] : vector<8x8xf32> to vector<8xf32>
    %70 = vector.shape_cast %69 : vector<8xf32> to vector<8x1xf32>
    %71 = vector.broadcast %70 : vector<8x1xf32> to vector<8x8xf32>
    %72 = arith.subf %68, %71 : vector<8x8xf32>
    %73 = math.exp %72 : vector<8x8xf32>
    %cst_37 = arith.constant dense<0.000000e+00> : vector<8xf32>
    %74 = vector.multi_reduction <add>, %73, %cst_37 [1] : vector<8x8xf32> to vector<8xf32>
    %75 = vector.shape_cast %74 : vector<8xf32> to vector<8x1xf32>
    %76 = tpu.reciprocal %75 {approx = true} : vector<8x1xf32> -> vector<8x1xf32>
    %77 = vector.broadcast %76 : vector<8x1xf32> to vector<8x8xf32>
    %78 = arith.mulf %73, %77 : vector<8x8xf32>
    %79 = arith.truncf %78 : vector<8x8xf32> to vector<8x8xbf16>
    %cst_38 = arith.constant dense<0.000000e+00> : vector<8x8xf32>
    %80 = tpu.matmul %79, %67, %cst_38 {dimension_numbers = #tpu.dot_dimension_numbers<[1], [0], [0], [1], [0, 0, 1, 1], [], []>} : vector<8x8xbf16>, vector<8x8xbf16>, vector<8x8xf32> -> vector<8x8xf32>
    %81 = arith.truncf %80 : vector<8x8xf32> to vector<8x8xbf16>
    %c0_39 = arith.constant 0 : index
    %c24_40 = arith.constant 24 : index
    %82 = vector.load %arg11[%c0_39, %c24_40] : memref<8x32xbf16, #tpu.memory_space<vmem>>, vector<8x8xbf16>
    tpu.vector_store %arg11[%c0_39, %c24_40], %81 {strides = array<i32>} : memref<8x32xbf16, #tpu.memory_space<vmem>>, vector<8x8xbf16>,
    %c0_41 = arith.constant 0 : index
    %c0_42 = arith.constant 0 : index
    %83 = vector.load %arg11[%c0_41, %c0_42] : memref<8x32xbf16, #tpu.memory_space<vmem>>, vector<8x32xbf16>
    %c0_43 = arith.constant 0 : index
    %c0_44 = arith.constant 0 : index
    %84 = vector.load %arg6[%c0_43, %c0_44] : memref<32x32xbf16, #tpu.memory_space<vmem>>, vector<32x32xbf16>
    %cst_45 = arith.constant dense<0.000000e+00> : vector<8x32xf32>
    %85 = tpu.matmul %83, %84, %cst_45 {dimension_numbers = #tpu.dot_dimension_numbers<[1], [0], [0], [1], [0, 0, 1, 1], [], []>} : vector<8x32xbf16>, vector<32x32xbf16>, vector<8x32xf32> -> vector<8x32xf32>
    %c0_46 = arith.constant 0 : index
    %c0_47 = arith.constant 0 : index
    %86 = vector.load %arg7[%c0_46, %c0_47] : memref<1x32xf32, #tpu.memory_space<vmem>>, vector<1x32xf32>
    %87 = vector.broadcast %86 : vector<1x32xf32> to vector<8x32xf32>
    %88 = arith.addf %85, %87 : vector<8x32xf32>
    %c0_48 = arith.constant 0 : index
    %c0_49 = arith.constant 0 : index
    %c0_50 = arith.constant 0 : index
    %89 = vector.load %arg8[%c0_48, %c0_49, %c0_50] : memref<1x8x32xf32, #tpu.memory_space<vmem>>, vector<1x8x32xf32>
    %90 = vector.shape_cast %89 : vector<1x8x32xf32> to vector<8x32xf32>
    %91 = vector.shape_cast %88 : vector<8x32xf32> to vector<1x8x32xf32>
    tpu.vector_store %arg8[%c0_48, %c0_49, %c0_50], %91 {strides = array<i32>} : memref<1x8x32xf32, #tpu.memory_space<vmem>>, vector<1x8x32xf32>,
    return
  }
  func.func @transform_0(%arg0: i32, %arg1: i32) -> (i32, i32, i32) {
    %c0_i32 = arith.constant 0 : i32
    %c0_i32_0 = arith.constant 0 : i32
    %c0_i32_1 = arith.constant 0 : i32
    return %arg0, %c0_i32, %c0_i32_0 : i32, i32, i32
  }
  func.func @transform_1(%arg0: i32, %arg1: i32) -> (i32, i32) {
    %c0_i32 = arith.constant 0 : i32
    %c0_i32_0 = arith.constant 0 : i32
    %c0_i32_1 = arith.constant 0 : i32
    return %c0_i32, %c0_i32_0 : i32, i32
  }
  func.func @transform_2(%arg0: i32, %arg1: i32) -> (i32, i32) {
    %c0_i32 = arith.constant 0 : i32
    %c0_i32_0 = arith.constant 0 : i32
    %c0_i32_1 = arith.constant 0 : i32
    return %c0_i32, %c0_i32_0 : i32, i32
  }
  func.func @transform_3(%arg0: i32, %arg1: i32) -> (i32, i32) {
    %c0_i32 = arith.constant 0 : i32
    %c0_i32_0 = arith.constant 0 : i32
    %c0_i32_1 = arith.constant 0 : i32
    return %c0_i32, %c0_i32_0 : i32, i32
  }
  func.func @transform_4(%arg0: i32, %arg1: i32) -> (i32, i32) {
    %c0_i32 = arith.constant 0 : i32
    %c0_i32_0 = arith.constant 0 : i32
    %c0_i32_1 = arith.constant 0 : i32
    return %c0_i32, %c0_i32_0 : i32, i32
  }
  func.func @transform_5(%arg0: i32, %arg1: i32) -> (i32, i32) {
    %c0_i32 = arith.constant 0 : i32
    %c0_i32_0 = arith.constant 0 : i32
    %c0_i32_1 = arith.constant 0 : i32
    return %c0_i32, %c0_i32_0 : i32, i32
  }
  func.func @transform_6(%arg0: i32, %arg1: i32) -> (i32, i32, i32) {
    %c0_i32 = arith.constant 0 : i32
    %c0_i32_0 = arith.constant 0 : i32
    return %arg0, %arg1, %c0_i32 : i32, i32, i32
  }
}

</mosaic_0001>

<bundles_post_ra>
// kernel: tpu_custom_call.1
= control target key start
LH: loop header
LB: loop body
LE: loop exit
PB: predicated region body
PF: predicated region fallthrough
CT: control target
= control target key end

     0   :  { %s2213_s0 = inlined_call_operand.hbm [shape: bf16[2,8,32], index: 0, kind: input, shape index: {}]   ;;  %s2214_s1 = inlined_call_operand.hbm [shape: bf16[32,32], index: 1, kind: input, shape index: {}]   ;;  %s2215_s2 = inlined_call_operand.hbm [shape: bf16[32,32], index: 2, kind: input, shape index: {}]   ;;  %s2216_s3 = inlined_call_operand.hbm [shape: bf16[32,32], index: 3, kind: input, shape index: {}]   ;;  %s2217_s4 = inlined_call_operand.hbm [shape: bf16[32,32], index: 4, kind: input, shape index: {}]   ;;  %s2218_s5 = inlined_call_operand.vmem [shape: f32[1,32], index: 5, kind: input, shape index: {}]   ;;  %s2219_s6 = inlined_call_operand.hbm [shape: f32[2,8,32], index: 6, kind: output, shape index: {}]  }
   0x1   :  { %2225 = sst [smem:[#allocation19_spill]] %s2214_s1 }
   0x2   :  { %11 = vsyncpa [#allocation6], 0 }
   0x3   :  { %13 = vsyncpa [#allocation6 + $0x1], 0 }
   0x4   :  { %14 = vsyncpa [#allocation9], 0 }
   0x5   :  { %15 = vsyncpa [#allocation12], 0 }
   0x6   :  { %16 = vsyncpa [#allocation7], 0 }
   0x7   :  { %18 = vsyncpa [#allocation7 + $0x1], 0  ;;  %s1818_s21 = smov 0   ;;  %s1820_s22 = smov 0  }
   0x8   :  { %s1822_s23 = smov 0   ;;  %s1824_s24 = smov 0  }
   0x9   :  { %s1826_s25 = smov 0   ;;  %s1828_s26 = smov 0  }
   0xa LB: > { %s2220_s27 = sadd.s32 4294967295, %s1765_s26   ;;  %p1230_p0 = scmp.ge.s32.totalorder %s1765_s26, 1  ;;  %s1765_s26 = sphi %s1828_s26, %s24_s26   ;;  %s1761_s25 = sphi %s1826_s25, %s2247_s25   ;;  %s1757_s24 = sphi %s1824_s24, %s2246_s24   ;;  %s1753_s23 = sphi %s1822_s23, %s2245_s23   ;;  %s1749_s22 = sphi %s1820_s22, %s2244_s22   ;;  %s1745_s21 = sphi %s1818_s21, %s2243_s21  }
   0xb   : > { %p1852_p1 = scmp.eq.s32.totalorder %s2220_s27, 0  ;;  %p200_p2 = scmp.lt.s32.totalorder %s1765_s26, 3 }
   0xc   : > { %s1767_s30 = smov [#allocation8]   ;;  %s1768_s9 = smov [#allocation11]  }
   0xd   : > { %s2226_s28 = scalar_select %p1852_p1, 1, 0 }
   0xe   : > { %p1857_p3 = pnand %p1230_p0, %p200_p2  ;;  %s212_s7 = sshll.u32 %s1767_s30, 4  ;;  %s1861_s7 = int_to_ptr.vmem [resolvable:$true] %s212_s7 }
   0xf   : > { %s238_s10 = sshll.u32 %s1768_s9, 4  ;;  %s1769_s11 = smov [#allocation10]   ;;  %s1872_s10 = int_to_ptr.vmem [resolvable:$true] %s238_s10 }
  0x10   : > { %s2227_s29 = scalar_select %p1857_p3, 1, 0 }
  0x11   : > { %p1410_p4 = pneg %p1857_p3  ;;  %s1874_s12 = sshll.u32 %s1769_s11, 4  ;;  %s226_s12 = int_to_ptr.vmem [resolvable:$true] %s1874_s12 }
  0x12   : > { %s2229_s1 = sld [smem:[#allocation19_spill]] }
  0x13   : > { %p1868_p6 = pnand %p1410_p4, %p1852_p1 }
  0x15   : > { %p1884_p8 = pneg %p1868_p6 }
  0x18   : > { %s1533_s15 = scalar_lea.hbm %s2229_s1, 256 }
  0x19   : > { %p1534_p7 = scmp.ne.s32.totalorder %s2229_s1, %s1533_s15  ;;  %p1540_p11 = scmp.lt.u32.totalorder %s1533_s15, %s2229_s1 }
  0x1b   : > { %p1536_p9 = pnand %p1884_p8, %p1534_p7 }
  0x1d   : > { %p1537_p10 = pneg %p1536_p9 }
  0x1f   : > { %p1542_p12 = pnand %p1540_p11, %p1537_p10 }
  0x21   : > { %1545 = shalt.err (!%p1542_p12)
}
  0x22   : > { %s1546_s30 = scalar_lea.vmem %s1861_s7, 256  ;;  %p1554_p4 = scmp.lt.s32.totalorder %s1861_s7, %s1861_s7 }
  0x23   : > { %p1547_p13 = scmp.ne.s32.totalorder %s1861_s7, %s1546_s30  ;;  %p1555_p5 = scmp.lt.s32.totalorder %s1546_s30, %s1546_s30 }
  0x25   : > { %p1549_p0 = pnand %p1547_p13, %p1884_p8  ;;  %p1556_p7 = por %p1555_p5, %p1554_p4 }
  0x27   : > { %p1550_p2 = pneg %p1549_p0 }
  0x29   : > { %p1557_p9 = pnand %p1556_p7, %p1550_p2 }
  0x2b   : > { %1560 = shalt.err (!%p1557_p9)
}
  0x2c   : > { %s1770_s9 = smov 64   ;;  %s1771_s11 = smov 4  }
  0x2d   : > { %1413 = dma.hbm_to_vmem [thread:$0]  (!%p1868_p6), %s2229_s1, 256, %s1861_s7, [#allocation9], %s1770_s9, %s1770_s9, %s1771_s11  }
  0x2e   : > { %s1561_s17 = scalar_lea.hbm %s2216_s3, 256 }
  0x2f   : > { %p1562_p5 = scmp.ne.s32.totalorder %s2216_s3, %s1561_s17  ;;  %p1568_p12 = scmp.lt.u32.totalorder %s1561_s17, %s2216_s3 }
  0x31   : > { %p1564_p10 = pnand %p1562_p5, %p1884_p8 }
  0x33   : > { %p1565_p11 = pneg %p1564_p10 }
  0x35   : > { %p1570_p13 = pnand %p1568_p12, %p1565_p11 }
  0x37   : > { %1573 = shalt.err (!%p1570_p13)
}
  0x38   : > { %s1574_s7 = scalar_lea.vmem %s1872_s10, 256  ;;  %p1582_p7 = scmp.lt.s32.totalorder %s1872_s10, %s1872_s10 }
  0x39   : > { %p1575_p0 = scmp.ne.s32.totalorder %s1872_s10, %s1574_s7  ;;  %p1583_p9 = scmp.lt.s32.totalorder %s1574_s7, %s1574_s7 }
  0x3b   : > { %p1577_p2 = pnand %p1575_p0, %p1884_p8  ;;  %p1584_p5 = por %p1583_p9, %p1582_p7 }
  0x3d   : > { %p1578_p4 = pneg %p1577_p2 }
  0x3f   : > { %p1585_p10 = pnand %p1584_p5, %p1578_p4 }
  0x41   : > { %1588 = shalt.err (!%p1585_p10)
}
  0x42   : > { %1419 = dma.hbm_to_vmem [thread:$0]  (!%p1868_p6), %s2216_s3, 256, %s1872_s10, [#allocation12], %s1770_s9, %s1770_s9, %s1771_s11  }
  0x43   : > { %s1589_s16 = scalar_lea.hbm %s2215_s2, 256 }
  0x44   : > { %p1590_p11 = scmp.ne.s32.totalorder %s2215_s2, %s1589_s16  ;;  %p1596_p0 = scmp.lt.u32.totalorder %s1589_s16, %s2215_s2 }
  0x46   : > { %p1592_p12 = pnand %p1590_p11, %p1884_p8 }
  0x48   : > { %p1593_p13 = pneg %p1592_p12 }
  0x4a   : > { %p1598_p2 = pnand %p1596_p0, %p1593_p13 }
  0x4c   : > { %1601 = shalt.err (!%p1598_p2)
}
  0x4d   : > { %s1602_s7 = scalar_lea.vmem %s226_s12, 256  ;;  %p1610_p5 = scmp.lt.s32.totalorder %s226_s12, %s226_s12 }
  0x4e   : > { %p1603_p4 = scmp.ne.s32.totalorder %s226_s12, %s1602_s7  ;;  %p1611_p10 = scmp.lt.s32.totalorder %s1602_s7, %s1602_s7 }
  0x50   : > { %p1605_p7 = pnand %p1603_p4, %p1884_p8  ;;  %p1612_p3 = por %p1611_p10, %p1610_p5 }
  0x52   : > { %p1606_p9 = pneg %p1605_p7 }
  0x54   : > { %p1613_p1 = pnand %p1612_p3, %p1606_p9 }
  0x56   : > { %1616 = shalt.err (!%p1613_p1)
}
  0x57   : > { %1416 = dma.hbm_to_vmem [thread:$0]  (!%p1868_p6), %s2215_s2, 256, %s226_s12, [#allocation9], %s1770_s9, %s1770_s9, %s1771_s11  }
  0x58   : > { %s1772_s13 = smov [#allocation13]   ;;  %s1617_s17 = scalar_lea.hbm %s2217_s4, 256 }
  0x59   : > { %s251_s14 = sshll.u32 %s1772_s13, 4  ;;  %p1618_p1 = scmp.ne.s32.totalorder %s2217_s4, %s1617_s17  ;;  %s252_s14 = int_to_ptr.vmem [resolvable:$true] %s251_s14 }
  0x5a   : > { %p1624_p12 = scmp.lt.u32.totalorder %s1617_s17, %s2217_s4 }
  0x5b   : > { %p1620_p3 = pnand %p1618_p1, %p1884_p8 }
  0x5d   : > { %p1621_p11 = pneg %p1620_p3 }
  0x5f   : > { %p1626_p13 = pnand %p1624_p12, %p1621_p11 }
  0x61   : > { %1629 = shalt.err (!%p1626_p13)
}
  0x62   : > { %s1630_s12 = scalar_lea.vmem %s252_s14, 256  ;;  %p1638_p7 = scmp.lt.s32.totalorder %s252_s14, %s252_s14 }
  0x63   : > { %p1631_p0 = scmp.ne.s32.totalorder %s252_s14, %s1630_s12  ;;  %p1639_p9 = scmp.lt.s32.totalorder %s1630_s12, %s1630_s12 }
  0x65   : > { %p1633_p2 = pnand %p1631_p0, %p1884_p8  ;;  %p1640_p5 = por %p1639_p9, %p1638_p7 }
  0x67   : > { %p1634_p4 = pneg %p1633_p2 }
  0x69   : > { %p1641_p10 = pnand %p1640_p5, %p1634_p4 }
  0x6b   : > { %1644 = shalt.err (!%p1641_p10)
}
  0x6c   : > { %1422 = dma.hbm_to_vmem [thread:$0]  (!%p1868_p6), %s2217_s4, 256, %s252_s14, [#allocation12], %s1770_s9, %s1770_s9, %s1771_s11  }
  0x6d   : > { %s1229_s8 = sadd.s32 4294967294, %s1765_s26   ;;  %s36_s18 = sadd.s32 1, %s1761_s25 }
  0x6e   : > { %p38_p8 = scmp.ge.s32.totalorder %s36_s18, 2  ;;  %s43_s13 = sadd.s32 1, %s1753_s23 }
  0x6f   : > { %p50_p1 = scmp.ne.s32.totalorder %s1753_s23, %s1749_s22  ;;  %p51_p3 = scmp.eq.s32.totalorder %s1765_s26, 0 }
  0x70   : > { %s2249_s18 = smov (%p38_p8, %s36_s18), 0  ;;  %p56_p12 = scmp.ne.s32.totalorder %s1749_s22, %s1745_s21 }
  0x71   : > { %p1985_p11 = por %p51_p3, %p50_p1  ;;  %s40_s9 = ssub.s32 %s1761_s25, %s2249_s18 }
  0x72   : > { %s2232_s11 = sadd.s32 4294967295, %s1765_s26   ;;  %p41_p13 = scmp.eq.s32.totalorder %s40_s9, 0 }
  0x73   : > { %p187_p6 = scmp.eq.s32.totalorder %s2232_s11, 1  ;;  %p2233_p0 = scmp.ne.s32.totalorder %s2226_s28, 0 }
  0x74   : > { %p193_p7 = scmp.eq.s32.totalorder %s1229_s8, 1  ;;  %p1435_p5 = scmp.lt.s32.totalorder %s1765_s26, 2 }
  0x75   : > { %p1997_p2 = por %p2233_p0, %p56_p12  ;;  %p2001_p4 = por %p187_p6, %p50_p1 }
  0x76   : > { %s2006_s17 = scalar_select %p41_p13, %s1753_s23, %s43_s13  }
  0x77   : > { %s2235_s16 = scalar_select %p2001_p4, 1, 0 }
  0x78   : > { %p2008_p9 = por %p193_p7, %p56_p12  ;;  %s268_s20 = sand.u32 1, %s1753_s23  }
  0x79   : > { %s1237_s30 = sshll.u32 %s1761_s25, 6  ;;  %s1236_s7 = sshll.u32 %s268_s20, 2 }
  0x7a   : > { %s2236_s19 = scalar_select %p2008_p9, 1, 0 }
  0x7b   : > { %s2018_s27 = scalar_lea.hbm %s2213_s0, %s1237_s30  ;;  %s272_s8 = scalar_lea.vmem [#allocation5], %s1236_s7 }
  0x7c   : > { %s279_s13 = sshll.u32 %s272_s8, 4  ;;  %p2022_p10 = pnand %p1435_p5, %p1985_p11  ;;  %s2026_s13 = int_to_ptr.vmem [resolvable:$true] %s279_s13 }
  0x7d   : > { %s269_s11 = scalar_lea.sflag [#allocation6], %s268_s20  ;;  %s1645_s1 = scalar_lea.hbm %s2018_s27, 64 }
  0x7e   : > { %p1646_p8 = scmp.ne.s32.totalorder %s2018_s27, %s1645_s1  ;;  %p1647_p1 = pneg %p2022_p10 }
  0x7f   : > { %s1650_s15 = scalar_lea.hbm %s2213_s0, 128  ;;  %p1651_p11 = scmp.lt.u32.totalorder %s2018_s27, %s2213_s0 }
  0x80   : > { %p1648_p3 = pnand %p1647_p1, %p1646_p8  ;;  %p1652_p6 = scmp.lt.u32.totalorder %s1650_s15, %s1645_s1 }
  0x81   : > { %p1654_p0 = scmp.lt.u32.totalorder %s1645_s1, %s2018_s27 }
  0x82   : > { %p1649_p12 = pneg %p1648_p3  ;;  %p1653_p13 = por %p1652_p6, %p1651_p11 }
  0x84   : > { %p1655_p7 = por %p1654_p0, %p1653_p13 }
  0x86   : > { %p1656_p5 = pnand %p1655_p7, %p1649_p12 }
  0x88   : > { %1659 = shalt.err (!%p1656_p5)
}
  0x89   : > { %s1660_s20 = scalar_lea.vmem %s2026_s13, 64  ;;  %s1773_s8 = smov [#allocation5]  }
  0x8a   : > { %p1661_p8 = scmp.ne.s32.totalorder %s2026_s13, %s1660_s20  ;;  %s1665_s30 = sshll.u32 %s1773_s8, 4  ;;  %s1666_s30 = int_to_ptr.vmem [resolvable:$false] %s1665_s30 }
  0x8b   : > { %s1667_s7 = scalar_lea.vmem %s1666_s30, 128  ;;  %p1668_p4 = scmp.lt.s32.totalorder %s2026_s13, %s1666_s30 }
  0x8c   : > { %p1663_p3 = pnand %p1661_p8, %p1647_p1  ;;  %p1669_p11 = scmp.lt.s32.totalorder %s1667_s7, %s1660_s20 }
  0x8e   : > { %p1664_p9 = pneg %p1663_p3  ;;  %p1670_p6 = por %p1669_p11, %p1668_p4 }
  0x90   : > { %p1671_p13 = pnand %p1670_p6, %p1664_p9 }
  0x92   : > { %1674 = shalt.err (!%p1671_p13)
}
  0x93   : > { %1426 = dma.hbm_to_vmem [thread:$0]  (!%p2022_p10), %s2018_s27, 64, %s2026_s13, %s269_s11  }
  0x94   : > { %p2238_p12 = scmp.ne.s32.totalorder %s2227_s29, 0 }
  0x95   : > { %s2056_s1 = sand.u32 (!%p2238_p12), 1, %s1749_s22  }
  0x96   : > { %288 = sbr.rel (%p2238_p12) target bundleno = 1630 (0x65e), region = 44  ;;  %s1239_s15 = sshll.u32 (!%p2238_p12), %s2056_s1, 2 }
  0x97   : > { %s291_s12 = scalar_lea.sflag (!%p2238_p12), [#allocation6], %s2056_s1  ;;  %s2060_s10 = scalar_lea.vmem (!%p2238_p12), [#allocation5], %s1239_s15 }
  0x9d   : > { %1728 = dma.done.wait (%p1997_p2), %s291_s12, 64  }
  0x9e   : > { %1730 = vsyncadd (%p1997_p2), %s291_s12, 4294967232  ;;  %p2239_p4 = scmp.ne.s32.totalorder %s2226_s28, 0 }
  0xa0   : > { %1732 = dma.done.wait (%p2239_p4), [#allocation9], 512  }
  0xa1   : > { %1734 = vsyncadd (%p2239_p4), [#allocation9], 4294966784 }
  0xa2   : > { %1736 = dma.done.wait (%p2239_p4), [#allocation12], 512  }
  0xa3   : > { %1738 = vsyncadd (%p2239_p4), [#allocation12], 4294966784  ;;  %v1774_v0 = vmov 0.0   ;;  %vm1775_vm0 = vmmov 0   ;;  %v1503_v1 = vld [vmem:[#allocation10] sm:$0xff]   ;;  %v1504_v2 = vld [vmem:[#allocation10 + $0x8] sm:$0xff]  }
  0xa4   : > { %1310 = vmatprep.subr.bf16.mxu0 %v1774_v0  ;;  %1314 = vmatprep.mubr.msk.bf16.mxu0 %vm1775_vm0, %v1774_v0  ;;  %v344_v3 = vld [vmem:[%s2060_s10] sm:$0xf]  ;;  %v1505_v4 = vld [vmem:[#allocation8] sm:$0xff]   ;;  %vm361_vm1 = vcmask 261120   ;;  %v1506_v6 = vld [vmem:[#allocation8 + $0x8] sm:$0xff]   ;;  %vm406_vm2 = vcmask 257024  }
  0xa5   : > { %1318 = vmatprep.subr.bf16.mxu1 %v1774_v0  ;;  %1322 = vmatprep.mubr.msk.bf16.mxu1 %vm1775_vm0, %v1774_v0  ;;  %v1507_v5 = vld [vmem:[#allocation11] sm:$0xff]   ;;  %v471_v7 = vld [vmem:[%s2060_s10] sm:$0xf]  ;;  %v1508_v8 = vld [vmem:[#allocation11 + $0x8] sm:$0xff]   ;;  %vm535_vm3 = vcmask 64512   ;;  %s1776_s28 = smov 112  }
  0xa6   : > { %1311 = vmatpush3.bf16.msra.mxu0 %v1503_v1  ;;  %1319 = vmatpush3.bf16.msra.mxu1 %v1507_v5  ;;  %s1777_s29 = smov 120   ;;  %s1778_s14 = smov 104   ;;  %vm597_vm4 = vcmask 1043456   ;;  %vm642_vm5 = vcmask 60416   ;;  %vm770_vm6 = vcmask 126016   ;;  %vm897_vm7 = vcmask 191616  }
  0xa7   : > { %1312 = vmatprep.subr.bf16.mxu0 %v1774_v0  ;;  %1320 = vmatprep.subr.bf16.mxu1 %v1774_v0  ;;  %s1779_s27 = smov 8   ;;  %s1780_s13 = smov 16   ;;  %vm1024_vm8 = vcmask 257216  }
  0xa8   : > { %s1781_s9 = smov 24   ;;  %s1244_s11 = sshll.u32 %s2056_s1, 3 }
  0xa9   : > { %s1276_s30 = sshll.u32 %s1757_s24, 7  ;;  %s338_s7 = scalar_lea.vmem [#allocation14], %s1244_s11 }
  0xaa   : > { %1313 = vmatpush3.bf16.msra.mxu0 %v1504_v2  ;;  %1321 = vmatpush3.bf16.msra.mxu1 %v1508_v8  ;;  %s1109_s15 = sshll.u32 %s338_s7, 4  ;;  %s1095_s24 = scalar_lea.sflag [#allocation7], %s2056_s1  ;;  %s2165_s15 = int_to_ptr.vmem [resolvable:$true] %s1109_s15 }
  0xab   : > { %1326 = vmatprep.subr.bf16.mxu0 %v1774_v0  ;;  %1334 = vmatprep.subr.bf16.mxu1 %v1774_v0  ;;  %p2240_p9 = scmp.ne.s32.totalorder %s2235_s16, 0 }
  0xad   : > { %1315 = vmatmul.mubr.msk.bf16.vlgmr.msra.gmra.mrb[0].mxu0 %vm361_vm1, %v344_v3  ;;  %1323 = vmatmul.mubr.msk.bf16.vlgmr.msra.gmra.mrb[0].mxu1 %vm361_vm1, %v344_v3 }
  0xae   : > { %1327 = vmatpush3.bf16.msra.mxu0 %v1505_v4  ;;  %1330 = vmatprep.mubr.msk.bf16.mxu0 %vm1775_vm0, %v1774_v0 }
  0xaf   : > { %1328 = vmatprep.subr.bf16.mxu0 %v1774_v0  ;;  %1336 = vmatprep.mubr.msk.bf16.mxu1 %vm1775_vm0, %v1774_v0 }
  0xb2   : > { %1329 = vmatpush3.bf16.msra.mxu0 %v1506_v6 }
  0xb3   : > { %1340 = vmatprep.subr.bf16.mxu0 %v1774_v0 }
  0xb5   : > { %1331 = vmatmul.mubr.msk.bf16.vlgmr.msra.gmra.mrb[4].mxu0 %vm361_vm1, %v471_v7 }
  0xb6   : > { %1342 = vmatprep.mubr.msk.bf16.mxu0 %vm1775_vm0, %v1774_v0 }
 0x180   : > { %v399_v9 = vpop.f32.mrb[0].mxu0  ;;  %v458_v24 = vpop.f32.mrb[0].mxu1 }
 0x181   : > { %v405_v10 = vpack.c.bf16 %v399_v9, %v399_v9  ;;  %v1316_v11 = vpop.f32.mrb[1].mxu0  ;;  %v464_v25 = vpack.c.bf16 %v458_v24, %v458_v24  ;;  %v1324_v26 = vpop.f32.mrb[1].mxu1 }
 0x182   : > { %v402_v12 = vpop.f32.mrb[2].mxu0  ;;  %v461_v27 = vpop.f32.mrb[2].mxu1 }
 0x183   : > { %407 = vst.msk [vmem:[#allocation2] sm:$0xf] %vm406_vm2, %v405_v10  ;;  %v1317_v13 = vpop.f32.mrb[3].mxu0  ;;  %465 = vst.msk [vmem:[#allocation3] sm:$0xf] %vm406_vm2, %v464_v25  ;;  %v1325_v28 = vpop.f32.mrb[3].mxu1 }
 0x188   : > { %v526_v14 = vpop.f32.mrb[4].mxu0 }
 0x189   : > { %v1332_v15 = vpop.f32.mrb[5].mxu0  ;;  %v532_v21 = vpack.c.bf16 %v526_v14, %v526_v14 }
 0x18a   : > { %v533_v16 = vld [vmem:[#allocation2] sm:$0xf]  ;;  %v529_v20 = vpop.f32.mrb[6].mxu0  ;;  %v534_v29 = vld [vmem:[#allocation3] sm:$0xf] }
 0x18b   : > { %v1509_v17 = vld [vmem:[#allocation2] ss:$0 sps:$4 sm:$0xff]   ;;  %v540_v18 = vsel %vm535_vm3, %v533_v16, 0  ;;  %v1333_v22 = vpop.f32.mrb[7].mxu0  ;;  %v599_v30 = vsel %vm597_vm4, %v534_v29, 0 }
 0x18c   : > { %v1510_v19 = vld [vmem:[#allocation2] ss:$0 sps:$4 sm:$0xff]   ;;  %1335 = vmatpush3.bf16.xpose.msra.mxu1 %v540_v18  ;;  %779 = vrot.lane.b32.xlu1 %v1509_v17, %s1776_s28  ;;  %v1512_v2 = vld [vmem:[#allocation3] ss:$0 sps:$4 sm:$0xff]  }
 0x18d   : > { %652 = vrot.lane.b32.xlu0 %v1510_v19, %s1777_s29  ;;  %1346 = vmatprep.subr.bf16.mxu1 %v1774_v0  ;;  %v1511_v23 = vld [vmem:[#allocation2] ss:$0 sps:$4 sm:$0xff]   ;;  %v1513_v18 = vld [vmem:[#allocation3] ss:$0 sps:$4 sm:$0xff]  }
 0x18e   : > { %1341 = vmatpush3.bf16.msra.mxu0 %v599_v30  ;;  %v1514_v22 = vld [vmem:[#allocation3] ss:$0 sps:$4 sm:$0xff]  }
 0x18f   : > { %1352 = vmatprep.subr.bf16.mxu0 %v1774_v0 }
 0x190   : > { %774 = vrot.lane.b32.xlu1 %v532_v21, %s1776_s28 }
 0x191   : > { %647 = vrot.lane.b32.xlu0 %v532_v21, %s1777_s29 }
 0x193   : > { %1337 = vmatmul.mubr.msk.bf16.vlgmr.msra.gmra.mrb[4].mxu1 %vm535_vm3, %v532_v21 }
 0x194   : > { %901 = vrot.lane.b32.xlu1 %v532_v21, %s1778_s14  ;;  %1348 = vmatprep.mubr.msk.bf16.mxu1 %vm1775_vm0, %v1774_v0 }
 0x195   : > { %906 = vrot.lane.b32.xlu0 %v1511_v23, %s1778_s14 }
 0x1fe   : > { %v780_v33 = vpop.permute.xlu1 %779 }
 0x1ff   : > { %v653_v31 = vpop.permute.xlu0 %652  ;;  %v785_v35 = vsel %vm535_vm3, %v780_v33, 0 }
 0x200   : > { %v658_v32 = vsel %vm535_vm3, %v653_v31, 0 }
 0x201   : > { %1347 = vmatpush3.bf16.xpose.msra.mxu1 %v658_v32 }
 0x202   : > { %1358 = vmatprep.subr.bf16.mxu1 %v1774_v0  ;;  %v775_v37 = vpop.permute.xlu1 %774 }
 0x203   : > { %v648_v34 = vpop.permute.xlu0 %647 }
 0x206   : > { %v902_v39 = vpop.permute.xlu1 %901 }
 0x207   : > { %v907_v36 = vpop.permute.xlu0 %906 }
 0x208   : > { %1349 = vmatmul.mubr.msk.bf16.vlgmr.msra.gmra.mrb[8].mxu1 %vm535_vm3, %v648_v34  ;;  %v912_v38 = vsel %vm535_vm3, %v907_v36, 0 }
 0x209   : > { %1359 = vmatpush3.bf16.xpose.msra.mxu1 %v785_v35  ;;  %1360 = vmatprep.mubr.msk.bf16.mxu1 %vm1775_vm0, %v1774_v0 }
 0x20a   : > { %1370 = vmatprep.subr.bf16.mxu1 %v1774_v0 }
 0x210   : > { %1361 = vmatmul.mubr.msk.bf16.vlgmr.msra.gmra.mrb[12].mxu1 %vm535_vm3, %v775_v37 }
 0x211   : > { %1371 = vmatpush3.bf16.xpose.msra.mxu1 %v912_v38  ;;  %1372 = vmatprep.mubr.msk.bf16.mxu1 %vm1775_vm0, %v1774_v0 }
 0x212   : > { %1382 = vmatprep.subr.bf16.mxu1 %v1774_v0 }
 0x218   : > { %1373 = vmatmul.mubr.msk.bf16.vlgmr.msra.gmra.mrb[16].mxu1 %vm535_vm3, %v902_v39 }
 0x219   : > { %1386 = vmatprep.mubr.msk.bf16.mxu1 %vm1775_vm0, %v1774_v0 }
 0x266   : > { %v576_v40 = vpop.f32.mrb[4].mxu1 }
 0x267   : > { %v1338_v41 = vpop.f32.mrb[5].mxu1  ;;  %v582_v42 = vsel %vm535_vm3, %v576_v40, -inf }
 0x268   : > { %583 = vmax.xlane.f32.xlu0 %v582_v42  ;;  %v579_v43 = vpop.f32.mrb[6].mxu1 }
 0x269   : > { %v1339_v44 = vpop.f32.mrb[7].mxu1 }
 0x2db   : > { %v694_v45 = vpop.f32.mrb[8].mxu1 }
 0x2dc   : > { %v1350_v46 = vpop.f32.mrb[9].mxu1  ;;  %v700_v47 = vsel %vm535_vm3, %v694_v45, -inf }
 0x2dd   : > { %701 = vmax.xlane.f32.xlu1 %v700_v47  ;;  %v697_v48 = vpop.f32.mrb[10].mxu1 }
 0x2de   : > { %v1351_v49 = vpop.f32.mrb[11].mxu1 }
 0x2e3   : > { %v821_v50 = vpop.f32.mrb[12].mxu1 }
 0x2e4   : > { %v1362_v51 = vpop.f32.mrb[13].mxu1  ;;  %v827_v52 = vsel %vm535_vm3, %v821_v50, -inf }
 0x2e5   : > { %828 = vmax.xlane.f32.xlu0 %v827_v52  ;;  %v824_v53 = vpop.f32.mrb[14].mxu1  ;;  %v1515_v52 = vld [vmem:[#allocation13] sm:$0xff]  }
 0x2e6   : > { %v1363_v54 = vpop.f32.mrb[15].mxu1  ;;  %1383 = vmatpush3.bf16.msra.mxu1 %v1515_v52 }
 0x2e7   : > { %v1516_v54 = vld [vmem:[#allocation13 + $0x8] sm:$0xff]   ;;  %1384 = vmatprep.subr.bf16.mxu1 %v1774_v0 }
 0x2ea   : > { %1385 = vmatpush3.bf16.msra.mxu1 %v1516_v54 }
 0x2eb   : > { %v948_v55 = vpop.f32.mrb[16].mxu1 }
 0x2ec   : > { %v1374_v56 = vpop.f32.mrb[17].mxu1  ;;  %v954_v57 = vsel %vm535_vm3, %v948_v55, -inf }
 0x2ed   : > { %955 = vmax.xlane.f32.xlu0 %v954_v57  ;;  %v951_v58 = vpop.f32.mrb[18].mxu1 }
 0x2ee   : > { %v1375_v59 = vpop.f32.mrb[19].mxu1 }
 0x2f5   : > { %v584_v60 = vpop.xlane.xlu0 %583 }
 0x2f6   : > { %v585_v61 = vsub.f32 %v576_v40, %v584_v60 }
 0x2f8   : > { %v586_v62 = vmul.f32 1.442695, %v585_v61 }
 0x2fa   : > { %1517 = vpow2.f32 %v586_v62 }
 0x304   : > { %v1518_v63 = vpop.eup %1517 }
 0x305   : > { %v588_v1 = vsel %vm535_vm3, %v1518_v63, 0.0 }
 0x306   : > { %589 = vadd.xlane.f32.xlu1 %v588_v1 }
 0x317   : > { %715 = vrot.lane.b32.xlu1 %v1512_v2, %s1777_s29  ;;  %s1675_s29 = scalar_lea.vmem %s2165_s15, 128 }
 0x318   : > { %p1676_p2 = scmp.ne.s32.totalorder %s2165_s15, %s1675_s29 }
 0x31a   : > { %p1677_p10 = pnand %p1676_p2, %p2240_p9 }
 0x31c   : > { %p1678_p1 = pneg %p1677_p10 }
 0x36a   : > { %v702_v3 = vpop.xlane.xlu1 %701 }
 0x36b   : > { %v703_v4 = vsub.f32 %v694_v45, %v702_v3 }
 0x36d   : > { %v704_v5 = vmul.f32 1.442695, %v703_v4  ;;  %v1271_v4 = vld [vmem:[%s2218_s5] ss:$0 sm:$0xff] }
 0x36f   : > { %1519 = vpow2.f32 %v704_v5 }
 0x372   : > { %v829_v6 = vpop.xlane.xlu0 %828 }
 0x373   : > { %v830_v7 = vsub.f32 %v821_v50, %v829_v6 }
 0x375   : > { %v831_v8 = vmul.f32 1.442695, %v830_v7 }
 0x377   : > { %1521 = vpow2.f32 %v831_v8 }
 0x379   : > { %v1520_v9 = vpop.eup %1519 }
 0x37a   : > { %v956_v10 = vpop.xlane.xlu0 %955  ;;  %v706_v11 = vsel %vm535_vm3, %v1520_v9, 0.0 }
 0x37b   : > { %v957_v12 = vsub.f32 %v948_v55, %v956_v10  ;;  %707 = vadd.xlane.f32.xlu0 %v706_v11 }
 0x37d   : > { %v958_v13 = vmul.f32 1.442695, %v957_v12 }
 0x37f   : > { %1523 = vpow2.f32 %v958_v13 }
 0x381   : > { %v1522_v14 = vpop.eup %1521 }
 0x382   : > { %v833_v15 = vsel %vm535_vm3, %v1522_v14, 0.0 }
 0x383   : > { %834 = vadd.xlane.f32.xlu1 %v833_v15 }
 0x389   : > { %v1524_v16 = vpop.eup %1523 }
 0x38a   : > { %v960_v17 = vsel %vm535_vm3, %v1524_v16, 0.0 }
 0x38b   : > { %961 = vadd.xlane.f32.xlu0 %v960_v17 }
 0x393   : > { %v590_v19 = vpop.xlane.xlu1 %589 }
 0x394   : > { %1525 = vrcp.f32 %v590_v19  ;;  %969 = vrot.lane.b32.xlu1 %v1513_v18, %s1778_s14  ;;  %s1782_s14 = smov [#allocation14]  }
 0x397   : > { %v716_v23 = vpop.permute.xlu1 %715 }
 0x398   : > { %v721_v25 = vsel %vm597_vm4, %v716_v23, 0 }
 0x39e   : > { %v1526_v20 = vpop.eup %1525 }
 0x39f   : > { %v592_v21 = vmul.f32 %v1526_v20, %v1518_v63 }
 0x3a1   : > { %842 = vrot.lane.b32.xlu0 %v1514_v22, %s1776_s28  ;;  %v593_v24 = vpack.c.bf16 %v592_v21, %v592_v21  ;;  %s2163_s28 = scalar_lea.hbm %s2219_s6, %s1276_s30 }
 0x3a3   : > { %1343 = vmatmul.mubr.msk.bf16.vlgmr.msra.gmra.mrb[8].mxu0 %vm535_vm3, %v593_v24 }
 0x3a4   : > { %1353 = vmatpush3.bf16.msra.mxu0 %v721_v25  ;;  %1354 = vmatprep.mubr.msk.bf16.mxu0 %vm1775_vm0, %v1774_v0 }
 0x3a5   : > { %1364 = vmatprep.subr.bf16.mxu0 %v1774_v0 }
 0x408   : > { %v708_v26 = vpop.xlane.xlu0 %707 }
 0x409   : > { %1527 = vrcp.f32 %v708_v26 }
 0x410   : > { %v835_v27 = vpop.xlane.xlu1 %834 }
 0x411   : > { %1529 = vrcp.f32 %v835_v27 }
 0x413   : > { %v1528_v28 = vpop.eup %1527 }
 0x414   : > { %v710_v29 = vmul.f32 %v1528_v28, %v1520_v9  ;;  %v970_v36 = vpop.permute.xlu1 %969 }
 0x415   : > { %v975_v38 = vsel %vm597_vm4, %v970_v36, 0 }
 0x416   : > { %v711_v30 = vpack.c.bf16 %v710_v29, %v710_v29 }
 0x418   : > { %1355 = vmatmul.mubr.msk.bf16.vlgmr.msra.gmra.mrb[12].mxu0 %vm535_vm3, %v711_v30  ;;  %v962_v31 = vpop.xlane.xlu0 %961 }
 0x419   : > { %1531 = vrcp.f32 %v962_v31  ;;  %1366 = vmatprep.mubr.msk.bf16.mxu0 %vm1775_vm0, %v1774_v0 }
 0x41b   : > { %v1530_v32 = vpop.eup %1529 }
 0x41c   : > { %v837_v33 = vmul.f32 %v1530_v32, %v1522_v14  ;;  %v843_v34 = vpop.permute.xlu0 %842 }
 0x41d   : > { %v848_v35 = vsel %vm597_vm4, %v843_v34, 0 }
 0x41e   : > { %1365 = vmatpush3.bf16.msra.mxu0 %v848_v35  ;;  %v838_v37 = vpack.c.bf16 %v837_v33, %v837_v33 }
 0x41f   : > { %1376 = vmatprep.subr.bf16.mxu0 %v1774_v0 }
 0x421   : > { %1367 = vmatmul.mubr.msk.bf16.vlgmr.msra.gmra.mrb[16].mxu0 %vm535_vm3, %v838_v37 }
 0x422   : > { %1377 = vmatpush3.bf16.msra.mxu0 %v975_v38  ;;  %1378 = vmatprep.mubr.msk.bf16.mxu0 %vm1775_vm0, %v1774_v0 }
 0x423   : > { %v1532_v39 = vpop.eup %1531 }
 0x424   : > { %v964_v40 = vmul.f32 %v1532_v39, %v1524_v16 }
 0x426   : > { %v965_v41 = vpack.c.bf16 %v964_v40, %v964_v40 }
 0x429   : > { %1379 = vmatmul.mubr.msk.bf16.vlgmr.msra.gmra.mrb[20].mxu0 %vm535_vm3, %v965_v41 }
 0x476   : > { %v635_v42 = vpop.f32.mrb[8].mxu0 }
 0x477   : > { %v641_v43 = vpack.c.bf16 %v635_v42, %v635_v42  ;;  %v1344_v44 = vpop.f32.mrb[9].mxu0 }
 0x478   : > { %v638_v45 = vpop.f32.mrb[10].mxu0 }
 0x479   : > { %643 = vst.msk [vmem:[#allocation4] sm:$0xf] %vm642_vm5, %v641_v43  ;;  %v1345_v46 = vpop.f32.mrb[11].mxu0 }
 0x4eb   : > { %v757_v47 = vpop.f32.mrb[12].mxu0 }
 0x4ec   : > { %v1279_v48 = vpack.c.bf16 %v757_v47, %v757_v47  ;;  %v1356_v49 = vpop.f32.mrb[13].mxu0 }
 0x4ed   : > { %v760_v50 = vpop.f32.mrb[14].mxu0 }
 0x4ee   : > { %767 = vrot.lane.b32.xlu1 %v1279_v48, %s1779_s27  ;;  %v1357_v51 = vpop.f32.mrb[15].mxu0  ;;  %s1679_s27 = sshll.u32 %s1782_s14, 4  ;;  %s1680_s27 = int_to_ptr.vmem [resolvable:$false] %s1679_s27 }
 0x4ef   : > { %p1682_p0 = scmp.lt.s32.totalorder %s2165_s15, %s1680_s27 }
 0x4f4   : > { %v884_v53 = vpop.f32.mrb[16].mxu0 }
 0x4f5   : > { %v1280_v55 = vpack.c.bf16 %v884_v53, %v884_v53  ;;  %v1368_v56 = vpop.f32.mrb[17].mxu0 }
 0x4f6   : > { %v887_v57 = vpop.f32.mrb[18].mxu0 }
 0x4f7   : > { %894 = vrot.lane.b32.xlu0 %v1280_v55, %s1780_s13  ;;  %v1369_v58 = vpop.f32.mrb[19].mxu0  ;;  %s1681_s13 = scalar_lea.vmem %s1680_s27, 256 }
 0x4f8   : > { %p1683_p7 = scmp.lt.s32.totalorder %s1681_s13, %s1675_s29 }
 0x4fa   : > { %p1684_p5 = por %p1683_p7, %p1682_p0 }
 0x4fc   : > { %v1011_v59 = vpop.f32.mrb[20].mxu0  ;;  %p1685_p8 = pnand %p1684_p5, %p1678_p1 }
 0x4fd   : > { %v1281_v60 = vpack.c.bf16 %v1011_v59, %v1011_v59  ;;  %v1380_v61 = vpop.f32.mrb[21].mxu0 }
 0x4fe   : > { %v1014_v62 = vpop.f32.mrb[22].mxu0 }
 0x4ff   : > { %1021 = vrot.lane.b32.xlu1 %v1281_v60, %s1781_s9  ;;  %v1381_v63 = vpop.f32.mrb[23].mxu0 }
 0x560   : > { %v768_v1 = vpop.permute.xlu1 %767 }
 0x561   : > { %771 = vst.msk [vmem:[#allocation4] sm:$0xf] %vm770_vm6, %v768_v1 }
 0x569   : > { %v895_v2 = vpop.permute.xlu0 %894 }
 0x56a   : > { %898 = vst.msk [vmem:[#allocation4] sm:$0xf] %vm897_vm7, %v895_v2 }
 0x571   : > { %v1022_v0 = vpop.permute.xlu1 %1021 }
 0x572   : > { %1025 = vst.msk [vmem:[#allocation4] sm:$0xf] %vm1024_vm8, %v1022_v0 }
 0x579   : > { %v1026_v3 = vld [vmem:[#allocation4] sm:$0xf] }
 0x57a   : > { %1387 = vmatmul.mubr.msk.bf16.vlgmr.msra.gmra.mrb[20].mxu1 %vm361_vm1, %v1026_v3 }
 0x64d   : > { %v1087_v5 = vpop.f32.mrb[20].mxu1 }
 0x64e   : > { %v1088_v6 = vadd.f32 %v1271_v4, %v1087_v5  ;;  %v1388_v7 = vpop.f32.mrb[21].mxu1 }
 0x64f   : > { %v1090_v8 = vpop.f32.mrb[22].mxu1 }
 0x650   : > { %v1389_v9 = vpop.f32.mrb[23].mxu1  ;;  %1093 = vst.msk [vmem:[%s338_s7] sm:$0xff] %vm361_vm1, %v1088_v6 }
 0x651   : > { %1688 = shalt.err (!%p1685_p8)
}
 0x652   : > { %s1689_s1 = scalar_lea.hbm %s2163_s28, 128  ;;  %s1693_s20 = scalar_lea.hbm %s2219_s6, 256 }
 0x653   : > { %p1690_p3 = scmp.ne.s32.totalorder %s2163_s28, %s1689_s1  ;;  %p1694_p13 = scmp.lt.u32.totalorder %s2163_s28, %s2219_s6 }
 0x654   : > { %p1695_p12 = scmp.lt.u32.totalorder %s1693_s20, %s1689_s1  ;;  %p1697_p2 = scmp.lt.u32.totalorder %s1689_s1, %s2163_s28 }
 0x655   : > { %p1691_p11 = pnand %p1690_p3, %p2240_p9 }
 0x656   : > { %p1696_p4 = por %p1695_p12, %p1694_p13 }
 0x657   : > { %p1692_p6 = pneg %p1691_p11 }
 0x658   : > { %p1698_p10 = por %p1697_p2, %p1696_p4 }
 0x65a   : > { %p1699_p1 = pnand %p1698_p10, %p1692_p6 }
 0x65c   : > { %1702 = shalt.err (!%p1699_p1)
}
 0x65d   : > { %1408 = dma.vmem_to_hbm [thread:$0]  (%p2240_p9), %s2165_s15, 128, %s2163_s28, %s1095_s24  }
 0x65e PF: > { %s1121_s7 = sand.u32 1, %s1745_s21   ;;  %p2241_p0 = scmp.ne.s32.totalorder %s2236_s19, 0 }
 0x65f   : > { %p2242_p7 = scmp.ge.s32.totalorder %s1765_s26, 2  ;;  %s1122_s12 = scalar_lea.sflag [#allocation7], %s1121_s7 }
 0x661   : > { %p1428_p5 = pnand %p2242_p7, %p2241_p0 }
 0x663   : > { %1740 = dma.done.wait (!%p1428_p5), %s1122_s12, 128  }
 0x664   : > { %1742 = vsyncadd (!%p1428_p5), %s1122_s12, 4294967168  ;;  %s24_s26 = sadd.s32 1, %s1765_s26   ;;  %s2243_s21 = smov %s1749_s22 }
 0x665   : > { %p21_p8 = scmp.ge.s32.totalorder %s24_s26, 4   ;;  %s2244_s22 = smov %s1753_s23 }
 0x666   : > { %s2245_s23 = smov %s2006_s17  ;;  %s2246_s24 = smov %s1761_s25 }
 0x667   : > { %s2247_s25 = smov %s2249_s18  ;;  %23 = sbr.rel (!%p21_p8) target bundleno = 10 (0xa), region = 110 }
 0x66e   :  { %1127 = vsyncpa [#allocation6], 1 }
 0x66f   :  { %1129 = vsyncpa [#allocation6 + $0x1], 1 }
 0x670   :  { %1130 = vsyncpa [#allocation9], 1 }
 0x671   :  { %1131 = vsyncpa [#allocation12], 1 }
 0x672   :  { %1132 = vsyncpa [#allocation7], 1 }
 0x673   :  { %1134 = vsyncpa [#allocation7 + $0x1], 1 }

</bundles_post_ra>
